<compile_context>
chip_gen: v7x
topology: tpu7x:2x2x1
jax: 0.10.0
libtpu: 0.0.40
codegen_flags: <defaults>
</compile_context>

<pallas_src>
import functools

import jax
import jax.numpy as jnp
from jax import lax
from jax.experimental import pallas as pl
from jax.experimental.pallas import tpu as pltpu

BN_EPS = 1e-5  # nn.BatchNorm2d default


def _residue_block_kernel(*refs, H, W, K, Cmid, Cout, negative_slope,
                          apply_dropout):
    if apply_dropout:
        (xin_ref, bf_ref, b3_ref, rows_ref, m1_ref, m2_ref, mask_ref,
         out_ref) = refs
    else:
        xin_ref, bf_ref, b3_ref, rows_ref, m1_ref, m2_ref, out_ref = refs
        mask_ref = None

    NH = xin_ref.shape[0]
    lmid = W * Cmid
    lout = W * Cout
    p = K // 2

    # Per-row height index + H-boundary validity masks for the shifted taps,
    # built ONCE and shared by both convs (broadcast multiply, not where()).
    hidx = lax.broadcasted_iota(jnp.int32, (NH, 1), 0) % H
    tap_masks = {}
    for dh in range(-p, p + 1):
        if dh == 0:
            continue
        valid = jnp.logical_and(hidx >= -dh, hidx < H - dh)
        tap_masks[dh] = valid.astype(jnp.float32)

    def im2col_h(xv):
        # (NH, L) -> (NH, K*L): lane-concat of the K height-shifted copies so
        # each 'same' conv is a single dense matmul against the merged banded
        # weights.  pltpu.roll is an XLU sublane rotation; the mask zeroes rows
        # whose source crossed an image (or batch) boundary.
        parts = []
        for kh in range(K):
            dh = kh - p
            if dh == 0:
                parts.append(xv)
            else:
                rolled = pltpu.roll(xv, shift=(-dh) % NH, axis=0)
                parts.append(rolled * tap_masks[dh])
        return jnp.concatenate(parts, axis=1)

    def bn_leaky(y, m_ref, gamma, beta):
        # Training-mode BatchNorm2d (biased batch stats over N,H,W) + leaky
        # ReLU in the lane-merged layout.  One stats matmul per BN:
        # [sum(y); sum(y*y)] @ M -> [mean; E[y^2]]  (M already holds 1/(NHW)).
        s1 = jnp.sum(y, axis=0, keepdims=True)
        s2 = jnp.sum(y * y, axis=0, keepdims=True)
        mom = jnp.dot(jnp.concatenate([s1, s2], axis=0), m_ref[...],
                      preferred_element_type=jnp.float32)
        mean = mom[0:1, :]
        var = mom[1:2, :] - mean * mean
        scale = lax.rsqrt(var + BN_EPS) * gamma
        shift = beta - mean * scale
        yn = y * scale + shift
        return jnp.maximum(yn, negative_slope * yn)

    rows = rows_ref[...]
    xin = xin_ref[...]

    # conv1 (shortcut) | conv2 fused along output lanes: one MXU push.
    fused = jnp.dot(im2col_h(xin), bf_ref[...],
                    preferred_element_type=jnp.float32)       # (NH, lout+lmid)
    init_m = fused[:, :lout]                                   # conv1 output
    x = bn_leaky(fused[:, lout:], m1_ref,
                 rows[0:1, :lmid], rows[1:2, :lmid])           # conv2->bn1->lrelu

    # conv3 -> dropout -> residual add -> bn2 -> leaky ReLU.
    y = jnp.dot(im2col_h(x), b3_ref[...],
                preferred_element_type=jnp.float32)            # (NH, lout)
    if apply_dropout:
        # conv3 bias matters only when it gets masked by dropout; otherwise it
        # (like b1/b2) cancels exactly inside the training-mode BatchNorm.
        y = (y + rows[4:5, :lout]) * mask_ref[...]
    y = y + init_m
    out_ref[...] = bn_leaky(y, m2_ref, rows[2:3, :lout], rows[3:4, :lout])


def prepare_params(params, *, N, H, W):
    """One-time operand preparation (hoisted out of the forward path)."""
    Cout, Cin, K, _ = params["w1"].shape
    Cmid = params["w2"].shape[0]
    p = K // 2

    def hwio(w):  # torch (Cout,Cin,Kh,Kw) -> (Kh,Kw,Cin,Cout)
        return jnp.transpose(jnp.asarray(w, jnp.float32), (2, 3, 1, 0))

    def banded_merged(w_t):
        # (K,K,ci,cl) -> (K*W*ci, W*cl): per-height-tap block-banded matrices
        # ('same' W zero-padding encoded by clipping the band), stacked along
        # the contraction axis to match the kernel's im2col_h lane order.
        ci, cl = w_t.shape[2], w_t.shape[3]
        mats = []
        for kh in range(K):
            B = jnp.zeros((W * ci, W * cl), jnp.float32)
            for kw in range(K):
                B = B + jnp.kron(jnp.eye(W, k=-(kw - p), dtype=jnp.float32),
                                 w_t[kh, kw])
            mats.append(B)
        return jnp.concatenate(mats, axis=0)

    def lane_row(v):  # per-channel vector -> lane-merged (W*C,) row
        return jnp.tile(jnp.asarray(v, jnp.float32), W)

    Bf = jnp.concatenate([banded_merged(hwio(params["w1"])),
                          banded_merged(hwio(params["w2"]))], axis=1)
    B3 = banded_merged(hwio(params["w3"]))

    # Packed per-channel rows: [g1, be1 (first W*Cmid lanes), g2, be2, b3].
    # Conv biases b1/b2 are intentionally omitted: a per-channel constant added
    # right before a training-mode BatchNorm cancels exactly in (x - mean).
    rows = jnp.zeros((5, W * Cout), jnp.float32)
    rows = rows.at[0, :W * Cmid].set(lane_row(params["g1"]))
    rows = rows.at[1, :W * Cmid].set(lane_row(params["be1"]))
    rows = rows.at[2].set(lane_row(params["g2"]))
    rows = rows.at[3].set(lane_row(params["be2"]))
    rows = rows.at[4].set(lane_row(params["b3"]))

    nhw = float(N * H * W)
    M1 = jnp.kron(jnp.ones((W, W), jnp.float32),
                  jnp.eye(Cmid, dtype=jnp.float32)) / nhw
    M2 = jnp.kron(jnp.ones((W, W), jnp.float32),
                  jnp.eye(Cout, dtype=jnp.float32)) / nhw
    return dict(Bf=Bf, B3=B3, rows=rows, M1=M1, M2=M2)


@functools.partial(jax.jit, static_argnames=("negative_slope", "apply_dropout"))
def residue_block_apply(x_nchw, prep, mask_lane, *, negative_slope,
                        apply_dropout):
    N, Cin, H, W = x_nchw.shape
    Bf, B3 = prep["Bf"], prep["B3"]
    K = Bf.shape[0] // (W * Cin)
    Cout = B3.shape[1] // W
    Cmid = B3.shape[0] // (K * W)
    NH = N * H

    # NCHW -> lane-merged (N*H, W*Cin): rows = N*H sublanes, lanes = W*C, so
    # every kernel operand/intermediate/output is lane-dense (64/128/192).
    xin = jnp.transpose(x_nchw, (0, 2, 3, 1)).astype(jnp.float32)
    xin = xin.reshape(NH, W * Cin)

    kernel = functools.partial(
        _residue_block_kernel, H=H, W=W, K=K, Cmid=Cmid, Cout=Cout,
        negative_slope=negative_slope, apply_dropout=apply_dropout)

    operands = [xin, Bf, B3, prep["rows"], prep["M1"], prep["M2"]]
    if apply_dropout:
        operands.append(mask_lane)

    out = pl.pallas_call(
        kernel,
        out_shape=jax.ShapeDtypeStruct((NH, W * Cout), jnp.float32),
        in_specs=[pl.BlockSpec(memory_space=pltpu.MemorySpace.VMEM)
                  for _ in operands],
        out_specs=pl.BlockSpec(memory_space=pltpu.MemorySpace.VMEM),
    )(*operands)

    return jnp.transpose(out.reshape(N, H, W, Cout), (0, 3, 1, 2))


def init_params(key, in_channels, out_channels, short_cut, kernel_size):
    K = kernel_size
    Cmid = out_channels // 2 if short_cut else out_channels
    ks = jax.random.split(key, 10)

    def conv_init(kw, kb, cout, cin):
        bound = 1.0 / float(cin * K * K) ** 0.5  # torch default init bound
        w = jax.random.uniform(kw, (cout, cin, K, K), jnp.float32, -bound, bound)
        b = jax.random.uniform(kb, (cout,), jnp.float32, -bound, bound)
        return w, b

    w1, b1 = conv_init(ks[0], ks[1], out_channels, in_channels)
    w2, b2 = conv_init(ks[2], ks[3], Cmid, in_channels)
    w3, b3 = conv_init(ks[4], ks[5], out_channels, Cmid)
    g1 = 1.0 + 0.1 * jax.random.normal(ks[6], (Cmid,), jnp.float32)
    be1 = 0.1 * jax.random.normal(ks[7], (Cmid,), jnp.float32)
    g2 = 1.0 + 0.1 * jax.random.normal(ks[8], (out_channels,), jnp.float32)
    be2 = 0.1 * jax.random.normal(ks[9], (out_channels,), jnp.float32)
    return dict(w1=w1, b1=b1, w2=w2, b2=b2, w3=w3, b3=b3,
                g1=g1, be1=be1, g2=g2, be2=be2)


def _ref_forward(x_nchw, params, negative_slope, drop_mask=None):
    # Pure-JAX reference of the module's forward (includes all conv biases);
    # optional precomputed (already 1/(1-p)-scaled) dropout keep mask in NHWC.
    dn = ("NHWC", "HWIO", "NHWC")
    x = jnp.transpose(x_nchw, (0, 2, 3, 1)).astype(jnp.float32)

    def conv(x, w, b):
        w = jnp.transpose(w, (2, 3, 1, 0))
        y = lax.conv_general_dilated(x, w, (1, 1), "SAME", dimension_numbers=dn)
        return y + b.reshape(1, 1, 1, -1)

    def bn(x, g, b):
        mean = jnp.mean(x, axis=(0, 1, 2), keepdims=True)
        var = jnp.mean((x - mean) ** 2, axis=(0, 1, 2), keepdims=True)
        return ((x - mean) * lax.rsqrt(var + BN_EPS) * g.reshape(1, 1, 1, -1)
                + b.reshape(1, 1, 1, -1))

    def lrelu(x):
        return jnp.where(x >= 0, x, negative_slope * x)

    init = conv(x, params["w1"], params["b1"])
    h = lrelu(bn(conv(x, params["w2"], params["b2"]), params["g1"], params["be1"]))
    h = conv(h, params["w3"], params["b3"])
    if drop_mask is not None:
        h = h * drop_mask
    h = h + init
    h = lrelu(bn(h, params["g2"], params["be2"]))
    return jnp.transpose(h, (0, 3, 1, 2))


if __name__ == "__main__":
    key = jax.random.PRNGKey(0)
    kx, kp = jax.random.split(key)

    # ResidueBlock(short_cut=True, drop_rate, in_channels=4, out_channels=8,
    #              padding_mode='zeros', stride=1, negative_slope=0.1,
    #              kernel_size=3, padding='same')
    x = jax.random.normal(kx, (2, 4, 16, 16), jnp.float32)
    params = init_params(kp, in_channels=4, out_channels=8,
                         short_cut=True, kernel_size=3)

    N, Cin, H, W = x.shape
    Cout = 8
    prep = prepare_params(params, N=N, H=H, W=W)   # one-time weight prep

    # Run 1: dropout disabled -> deterministic check against pure-JAX reference.
    out0 = jax.block_until_ready(
        residue_block_apply(x, prep, None, negative_slope=0.1,
                            apply_dropout=False))
    ref0 = _ref_forward(x, params, 0.1)
    assert out0.shape == (2, 8, 16, 16)
    assert bool(jnp.allclose(out0, ref0, atol=1e-3, rtol=1e-3)), "mismatch (no dropout)"

    # Run 2: dropout active (train=True).  The keep mask is derived host-side
    # from jax.random (torch's RNG stream cannot be bit-matched), so the
    # reference consumes exactly the same mask.
    seed, drop_rate = 1234, 0.1
    keep = jax.random.bernoulli(jax.random.PRNGKey(seed), 1.0 - drop_rate,
                                (N, H, W, Cout))
    mask_nhwc = keep.astype(jnp.float32) / (1.0 - drop_rate)
    mask_lane = mask_nhwc.reshape(N * H, W * Cout)
    out1 = jax.block_until_ready(
        residue_block_apply(x, prep, mask_lane, negative_slope=0.1,
                            apply_dropout=True))
    ref1 = _ref_forward(x, params, 0.1, drop_mask=mask_nhwc)
    assert out1.shape == (2, 8, 16, 16)
    assert bool(jnp.allclose(out1, ref1, atol=1e-3, rtol=1e-3)), "mismatch (dropout)"

    print("KERNEL_OK")
</pallas_src>

<mosaic_0001>
module attributes {stable_mosaic.version = 11 : i64} {
  func.func @_residue_block_kernel(%arg0: memref<32x64xf32, #tpu.memory_space<vmem>>, %arg1: memref<192x192xf32, #tpu.memory_space<vmem>>, %arg2: memref<192x128xf32, #tpu.memory_space<vmem>>, %arg3: memref<5x128xf32, #tpu.memory_space<vmem>>, %arg4: memref<64x64xf32, #tpu.memory_space<vmem>>, %arg5: memref<128x128xf32, #tpu.memory_space<vmem>>, %arg6: memref<32x128xf32, #tpu.memory_space<vmem>>) attributes {dimension_semantics = [], scalar_prefetch = 0 : i64, scratch_operands = 0 : i64, tpu.core_type = #tpu.core_type<tc>} {
    %0 = tpu.iota {dimensions = array<i32: 0>} : vector<32x1xi32>
    %c16_i32 = arith.constant 16 : i32
    %c0_i32 = arith.constant 0 : i32
    %1 = arith.cmpi eq, %c16_i32, %c0_i32 : i32
    %c1_i32 = arith.constant 1 : i32
    %2 = arith.select %1, %c1_i32, %c16_i32 : i32
    %3 = vector.broadcast %2 : i32 to vector<32x1xi32>
    %4 = arith.remsi %0, %3 : vector<32x1xi32>
    %c0_i32_0 = arith.constant 0 : i32
    %5 = vector.broadcast %c0_i32_0 : i32 to vector<32x1xi32>
    %6 = arith.cmpi ne, %4, %5 : vector<32x1xi32>
    %c0_i32_1 = arith.constant 0 : i32
    %7 = vector.broadcast %c0_i32_1 : i32 to vector<32x1xi32>
    %8 = arith.cmpi slt, %4, %7 : vector<32x1xi32>
    %c0_i32_2 = arith.constant 0 : i32
    %9 = arith.cmpi slt, %2, %c0_i32_2 : i32
    %10 = vector.broadcast %9 : i1 to vector<32x1xi1>
    %11 = vector.broadcast %10 : vector<32x1xi1> to vector<32x1xi1>
    %12 = arith.xori %8, %11 : vector<32x1xi1>
    %13 = arith.andi %12, %6 : vector<32x1xi1>
    %14 = vector.broadcast %2 : i32 to vector<32x1xi32>
    %15 = arith.addi %4, %14 : vector<32x1xi32>
    %16 = arith.select %13, %15, %4 : vector<32x1xi1>, vector<32x1xi32>
    %c1_i32_3 = arith.constant 1 : i32
    %17 = vector.broadcast %c1_i32_3 : i32 to vector<32x1xi32>
    %18 = arith.cmpi sge, %16, %17 : vector<32x1xi32>
    %c17_i32 = arith.constant 17 : i32
    %19 = vector.broadcast %c17_i32 : i32 to vector<32x1xi32>
    %20 = arith.cmpi slt, %16, %19 : vector<32x1xi32>
    %21 = arith.andi %18, %20 : vector<32x1xi1>
    %22 = arith.extui %21 : vector<32x1xi1> to vector<32x1xi32>
    %23 = arith.sitofp %22 : vector<32x1xi32> to vector<32x1xf32>
    %c-1_i32 = arith.constant -1 : i32
    %24 = vector.broadcast %c-1_i32 : i32 to vector<32x1xi32>
    %25 = arith.cmpi sge, %16, %24 : vector<32x1xi32>
    %c15_i32 = arith.constant 15 : i32
    %26 = vector.broadcast %c15_i32 : i32 to vector<32x1xi32>
    %27 = arith.cmpi slt, %16, %26 : vector<32x1xi32>
    %28 = arith.andi %25, %27 : vector<32x1xi1>
    %29 = arith.extui %28 : vector<32x1xi1> to vector<32x1xi32>
    %30 = arith.sitofp %29 : vector<32x1xi32> to vector<32x1xf32>
    %c0 = arith.constant 0 : index
    %c0_4 = arith.constant 0 : index
    %31 = vector.load %arg3[%c0, %c0_4] : memref<5x128xf32, #tpu.memory_space<vmem>>, vector<5x128xf32>
    %c0_5 = arith.constant 0 : index
    %c0_6 = arith.constant 0 : index
    %32 = vector.load %arg0[%c0_5, %c0_6] : memref<32x64xf32, #tpu.memory_space<vmem>>, vector<32x64xf32>
    %c1_i32_7 = arith.constant 1 : i32
    %33 = tpu.dynamic_rotate %32 by %c1_i32_7 dim 0 : vector<32x64xf32>, i32 -> vector<32x64xf32>
    %34 = vector.broadcast %23 : vector<32x1xf32> to vector<32x64xf32>
    %35 = arith.mulf %33, %34 : vector<32x64xf32>
    %c31_i32 = arith.constant 31 : i32
    %36 = tpu.dynamic_rotate %32 by %c31_i32 dim 0 : vector<32x64xf32>, i32 -> vector<32x64xf32>
    %37 = vector.broadcast %30 : vector<32x1xf32> to vector<32x64xf32>
    %38 = arith.mulf %36, %37 : vector<32x64xf32>
    %39 = tpu.concatenate %35, %32, %38 in 1 : vector<32x64xf32>, vector<32x64xf32>, vector<32x64xf32> -> vector<32x192xf32>
    %c0_8 = arith.constant 0 : index
    %c0_9 = arith.constant 0 : index
    %40 = vector.load %arg1[%c0_8, %c0_9] : memref<192x192xf32, #tpu.memory_space<vmem>>, vector<192x192xf32>
    %cst = arith.constant dense<0.000000e+00> : vector<32x192xf32>
    %41 = tpu.matmul %39, %40, %cst {dimension_numbers = #tpu.dot_dimension_numbers<[1], [0], [0], [1], [0, 0, 1, 1], [], []>} : vector<32x192xf32>, vector<192x192xf32>, vector<32x192xf32> -> vector<32x192xf32>
    %42 = vector.extract_strided_slice %41 {offsets = [0, 0], sizes = [32, 128], strides = [1, 1]} : vector<32x192xf32> to vector<32x128xf32>
    %43 = vector.extract_strided_slice %41 {offsets = [0, 128], sizes = [32, 64], strides = [1, 1]} : vector<32x192xf32> to vector<32x64xf32>
    %44 = vector.extract_strided_slice %31 {offsets = [0, 0], sizes = [1, 64], strides = [1, 1]} : vector<5x128xf32> to vector<1x64xf32>
    %45 = vector.extract_strided_slice %31 {offsets = [1, 0], sizes = [1, 64], strides = [1, 1]} : vector<5x128xf32> to vector<1x64xf32>
    %cst_10 = arith.constant dense<0.000000e+00> : vector<64xf32>
    %46 = vector.multi_reduction <add>, %43, %cst_10 [0] : vector<32x64xf32> to vector<64xf32>
    %47 = vector.shape_cast %46 : vector<64xf32> to vector<1x64xf32>
    %48 = arith.mulf %43, %43 : vector<32x64xf32>
    %cst_11 = arith.constant dense<0.000000e+00> : vector<64xf32>
    %49 = vector.multi_reduction <add>, %48, %cst_11 [0] : vector<32x64xf32> to vector<64xf32>
    %50 = vector.shape_cast %49 : vector<64xf32> to vector<1x64xf32>
    %51 = tpu.concatenate %47, %50 in 0 : vector<1x64xf32>, vector<1x64xf32> -> vector<2x64xf32>
    %c0_12 = arith.constant 0 : index
    %c0_13 = arith.constant 0 : index
    %52 = vector.load %arg4[%c0_12, %c0_13] : memref<64x64xf32, #tpu.memory_space<vmem>>, vector<64x64xf32>
    %cst_14 = arith.constant dense<0.000000e+00> : vector<2x64xf32>
    %53 = tpu.matmul %51, %52, %cst_14 {dimension_numbers = #tpu.dot_dimension_numbers<[1], [0], [0], [1], [0, 0, 1, 1], [], []>} : vector<2x64xf32>, vector<64x64xf32>, vector<2x64xf32> -> vector<2x64xf32>
    %54 = vector.extract_strided_slice %53 {offsets = [0, 0], sizes = [1, 64], strides = [1, 1]} : vector<2x64xf32> to vector<1x64xf32>
    %55 = vector.extract_strided_slice %53 {offsets = [1, 0], sizes = [1, 64], strides = [1, 1]} : vector<2x64xf32> to vector<1x64xf32>
    %56 = arith.mulf %54, %54 : vector<1x64xf32>
    %57 = arith.subf %55, %56 : vector<1x64xf32>
    %cst_15 = arith.constant 9.99999974E-6 : f32
    %58 = vector.broadcast %cst_15 : f32 to vector<1x64xf32>
    %59 = arith.addf %57, %58 : vector<1x64xf32>
    %60 = math.rsqrt %59 : vector<1x64xf32>
    %61 = arith.mulf %60, %44 : vector<1x64xf32>
    %62 = arith.mulf %54, %61 : vector<1x64xf32>
    %63 = arith.subf %45, %62 : vector<1x64xf32>
    %64 = vector.broadcast %61 : vector<1x64xf32> to vector<32x64xf32>
    %65 = arith.mulf %43, %64 : vector<32x64xf32>
    %66 = vector.broadcast %63 : vector<1x64xf32> to vector<32x64xf32>
    %67 = arith.addf %65, %66 : vector<32x64xf32>
    %cst_16 = arith.constant 1.000000e-01 : f32
    %68 = vector.broadcast %cst_16 : f32 to vector<32x64xf32>
    %69 = arith.mulf %68, %67 : vector<32x64xf32>
    %70 = arith.maximumf %67, %69 : vector<32x64xf32>
    %c1_i32_17 = arith.constant 1 : i32
    %71 = tpu.dynamic_rotate %70 by %c1_i32_17 dim 0 : vector<32x64xf32>, i32 -> vector<32x64xf32>
    %72 = vector.broadcast %23 : vector<32x1xf32> to vector<32x64xf32>
    %73 = arith.mulf %71, %72 : vector<32x64xf32>
    %c31_i32_18 = arith.constant 31 : i32
    %74 = tpu.dynamic_rotate %70 by %c31_i32_18 dim 0 : vector<32x64xf32>, i32 -> vector<32x64xf32>
    %75 = vector.broadcast %30 : vector<32x1xf32> to vector<32x64xf32>
    %76 = arith.mulf %74, %75 : vector<32x64xf32>
    %77 = tpu.concatenate %73, %70, %76 in 1 : vector<32x64xf32>, vector<32x64xf32>, vector<32x64xf32> -> vector<32x192xf32>
    %c0_19 = arith.constant 0 : index
    %c0_20 = arith.constant 0 : index
    %78 = vector.load %arg2[%c0_19, %c0_20] : memref<192x128xf32, #tpu.memory_space<vmem>>, vector<192x128xf32>
    %cst_21 = arith.constant dense<0.000000e+00> : vector<32x128xf32>
    %79 = tpu.matmul %77, %78, %cst_21 {dimension_numbers = #tpu.dot_dimension_numbers<[1], [0], [0], [1], [0, 0, 1, 1], [], []>} : vector<32x192xf32>, vector<192x128xf32>, vector<32x128xf32> -> vector<32x128xf32>
    %80 = arith.addf %79, %42 : vector<32x128xf32>
    %81 = vector.extract_strided_slice %31 {offsets = [2, 0], sizes = [1, 128], strides = [1, 1]} : vector<5x128xf32> to vector<1x128xf32>
    %82 = vector.extract_strided_slice %31 {offsets = [3, 0], sizes = [1, 128], strides = [1, 1]} : vector<5x128xf32> to vector<1x128xf32>
    %cst_22 = arith.constant dense<0.000000e+00> : vector<128xf32>
    %83 = vector.multi_reduction <add>, %80, %cst_22 [0] : vector<32x128xf32> to vector<128xf32>
    %84 = vector.shape_cast %83 : vector<128xf32> to vector<1x128xf32>
    %85 = arith.mulf %80, %80 : vector<32x128xf32>
    %cst_23 = arith.constant dense<0.000000e+00> : vector<128xf32>
    %86 = vector.multi_reduction <add>, %85, %cst_23 [0] : vector<32x128xf32> to vector<128xf32>
    %87 = vector.shape_cast %86 : vector<128xf32> to vector<1x128xf32>
    %88 = tpu.concatenate %84, %87 in 0 : vector<1x128xf32>, vector<1x128xf32> -> vector<2x128xf32>
    %c0_24 = arith.constant 0 : index
    %c0_25 = arith.constant 0 : index
    %89 = vector.load %arg5[%c0_24, %c0_25] : memref<128x128xf32, #tpu.memory_space<vmem>>, vector<128x128xf32>
    %cst_26 = arith.constant dense<0.000000e+00> : vector<2x128xf32>
    %90 = tpu.matmul %88, %89, %cst_26 {dimension_numbers = #tpu.dot_dimension_numbers<[1], [0], [0], [1], [0, 0, 1, 1], [], []>} : vector<2x128xf32>, vector<128x128xf32>, vector<2x128xf32> -> vector<2x128xf32>
    %91 = vector.extract_strided_slice %90 {offsets = [0, 0], sizes = [1, 128], strides = [1, 1]} : vector<2x128xf32> to vector<1x128xf32>
    %92 = vector.extract_strided_slice %90 {offsets = [1, 0], sizes = [1, 128], strides = [1, 1]} : vector<2x128xf32> to vector<1x128xf32>
    %93 = arith.mulf %91, %91 : vector<1x128xf32>
    %94 = arith.subf %92, %93 : vector<1x128xf32>
    %cst_27 = arith.constant 9.99999974E-6 : f32
    %95 = vector.broadcast %cst_27 : f32 to vector<1x128xf32>
    %96 = arith.addf %94, %95 : vector<1x128xf32>
    %97 = math.rsqrt %96 : vector<1x128xf32>
    %98 = arith.mulf %97, %81 : vector<1x128xf32>
    %99 = arith.mulf %91, %98 : vector<1x128xf32>
    %100 = arith.subf %82, %99 : vector<1x128xf32>
    %101 = vector.broadcast %98 : vector<1x128xf32> to vector<32x128xf32>
    %102 = arith.mulf %80, %101 : vector<32x128xf32>
    %103 = vector.broadcast %100 : vector<1x128xf32> to vector<32x128xf32>
    %104 = arith.addf %102, %103 : vector<32x128xf32>
    %cst_28 = arith.constant 1.000000e-01 : f32
    %105 = vector.broadcast %cst_28 : f32 to vector<32x128xf32>
    %106 = arith.mulf %105, %104 : vector<32x128xf32>
    %107 = arith.maximumf %104, %106 : vector<32x128xf32>
    %c0_29 = arith.constant 0 : index
    %c0_30 = arith.constant 0 : index
    %108 = vector.load %arg6[%c0_29, %c0_30] : memref<32x128xf32, #tpu.memory_space<vmem>>, vector<32x128xf32>
    tpu.vector_store %arg6[%c0_29, %c0_30], %107 {strides = array<i32>} : memref<32x128xf32, #tpu.memory_space<vmem>>, vector<32x128xf32>,
    return
  }
}

</mosaic_0001>

<bundles_post_ra>
// kernel: residue_block_apply.1
= control target key start
LH: loop header
LB: loop body
LE: loop exit
PB: predicated region body
PF: predicated region fallthrough
CT: control target
= control target key end

     0   :  { %11 = vsyncpa [#allocation3], 0  ;;  %s1571_s0 = inlined_call_operand.vmem [shape: f32[32,64], index: 0, kind: input, shape index: {}]   ;;  %s1572_s1 = inlined_call_operand.vmem [shape: f32[192,192], index: 1, kind: input, shape index: {}]   ;;  %s1573_s2 = inlined_call_operand.hbm [shape: f32[192,128], index: 2, kind: input, shape index: {}]   ;;  %s1574_s3 = inlined_call_operand.vmem [shape: f32[5,128], index: 3, kind: input, shape index: {}]   ;;  %s1575_s4 = inlined_call_operand.hbm [shape: f32[64,64], index: 4, kind: input, shape index: {}]   ;;  %s1576_s5 = inlined_call_operand.vmem [shape: f32[128,128], index: 5, kind: input, shape index: {}]   ;;  %s1577_s6 = inlined_call_operand.vmem [shape: f32[32,128], index: 6, kind: output, shape index: {}]  }
   0x1   :  { %12 = vsyncpa [#allocation5], 0  ;;  %s1100_s21 = smov [#allocation2]   ;;  %s1052_s25 = scalar_lea.hbm %s1573_s2, 3072 }
   0x2   :  { %s22_s22 = sshll.u32 %s1100_s21, 4  ;;  %p1053_p0 = scmp.ne.s32.totalorder %s1573_s2, %s1052_s25  ;;  %s23_s22 = int_to_ptr.vmem [resolvable:$true] %s22_s22 }
   0x3   :  { %p1056_p1 = scmp.lt.u32.totalorder %s1052_s25, %s1573_s2 }
   0x5   :  { %p1058_p2 = pnand %p1056_p1, %p1053_p0 }
   0x7   :  { %1061 = shalt.err (!%p1058_p2)
}
   0x8   :  { %s1062_s30 = scalar_lea.vmem %s23_s22, 3072  ;;  %p1067_p4 = scmp.lt.s32.totalorder %s23_s22, %s23_s22 }
   0x9   :  { %p1063_p3 = scmp.ne.s32.totalorder %s23_s22, %s1062_s30  ;;  %p1068_p5 = scmp.lt.s32.totalorder %s1062_s30, %s1062_s30 }
   0xb   :  { %p1069_p6 = por %p1068_p5, %p1067_p4 }
   0xd   :  { %p1070_p7 = pnand %p1069_p6, %p1063_p3 }
   0xf   :  { %1073 = shalt.err (!%p1070_p7)
}
  0x10   :  { %s1101_s7 = smov 128   ;;  %s1102_s8 = smov 8  }
  0x11   :  { %28 = dma.hbm_to_vmem [thread:$0]  %s1573_s2, 3072, %s23_s22, [#allocation3], %s1101_s7, %s1101_s7, %s1102_s8  }
  0x12   :  { %s1103_s11 = smov [#allocation4]   ;;  %s1074_s15 = scalar_lea.hbm %s1575_s4, 1024 }
  0x13   :  { %s36_s12 = sshll.u32 %s1103_s11, 4  ;;  %p1075_p8 = scmp.ne.s32.totalorder %s1575_s4, %s1074_s15  ;;  %s37_s12 = int_to_ptr.vmem [resolvable:$true] %s36_s12 }
  0x14   :  { %p1078_p9 = scmp.lt.u32.totalorder %s1074_s15, %s1575_s4 }
  0x16   :  { %p1080_p10 = pnand %p1078_p9, %p1075_p8 }
  0x18   :  { %1083 = shalt.err (!%p1080_p10)
}
  0x19   :  { %s1084_s20 = scalar_lea.vmem %s37_s12, 1024  ;;  %p1089_p12 = scmp.lt.s32.totalorder %s37_s12, %s37_s12 }
  0x1a   :  { %p1085_p11 = scmp.ne.s32.totalorder %s37_s12, %s1084_s20  ;;  %p1090_p13 = scmp.lt.s32.totalorder %s1084_s20, %s1084_s20 }
  0x1c   :  { %p1091_p0 = por %p1090_p13, %p1089_p12 }
  0x1e   :  { %p1092_p1 = pnand %p1091_p0, %p1085_p11 }
  0x20   :  { %1095 = shalt.err (!%p1092_p1)
}
  0x21   :  { %42 = dma.hbm_to_vmem [thread:$0]  %s1575_s4, 1024, %s37_s12, [#allocation5], %s1101_s7, %s1101_s7, %s1102_s8  }
  0x22   :  { %1096 = dma.done.wait [#allocation3], 3072  }
  0x23   :  { %1097 = vsyncadd [#allocation3], 4294964224 }
  0x24   :  { %1098 = dma.done.wait [#allocation5], 1024  }
  0x25   :  { %1099 = vsyncadd [#allocation5], 4294966272  ;;  %v51_v0 = vlaneseq  ;;  %v145_v2 = vld [vmem:[%s1571_s0] sm:$0xff]  ;;  %v146_v3 = vld [vmem:[%s1571_s0 + $0x8] sm:$0xff]  ;;  %vm191_vm1 = vcmask 523264   ;;  %s1104_s4 = smov 64  }
  0x26   :  { %v147_v4 = vld [vmem:[%s1571_s0 + $0x10] sm:$0xff]  ;;  %179 = vrot.lane.b32.xlu0 %v145_v2, %s1104_s4  ;;  %v149_v5 = vrot.slane %v145_v2, 7  ;;  %v162_v6 = vrot.slane %v145_v2, 1  ;;  %v150_v7 = vrot.slane %v146_v3, 7  ;;  %v163_v8 = vrot.slane %v146_v3, 1  ;;  %v148_v9 = vld [vmem:[%s1571_s0 + $0x18] sm:$0xff] }
  0x27   :  { %v1167_v1 = vshrl.u32 %v51_v0, 7  ;;  %183 = vrot.lane.b32.xlu1 %v147_v4, %s1104_s4  ;;  %v197_v10 = vld [vmem:[%s1572_s1 + $0x8] sm:$0xff]  ;;  %v164_v11 = vrot.slane %v147_v4, 1  ;;  %v152_v12 = vrot.slane %v148_v9, 7  ;;  %v165_v13 = vrot.slane %v148_v9, 1  ;;  %v199_v14 = vld [vmem:[%s1572_s1 + $0x18] sm:$0xff] }
  0x28   :  { %v196_v15 = vld [vmem:[%s1572_s1] sm:$0xff]  ;;  %v151_v16 = vrot.slane %v147_v4, 7  ;;  %v920_v17 = vpack.c.bf16 %v199_v14, %v197_v10  ;;  %v198_v18 = vld [vmem:[%s1572_s1 + $0x10] sm:$0xff]  ;;  %v201_v19 = vld [vmem:[%s1572_s1 + $0x28] sm:$0xff]  ;;  %vm1107_vm7 = vmmov 0   ;;  %vm375_vm8 = vcmask 1040384  }
  0x29   :  { %vm166_vm0 = vcmp.lt.s32.totalorder %v1167_v1, 7  ;;  %vm153_vm2 = vcmp.lt.s32.totalorder %v1167_v1, 1  ;;  %v203_v20 = vld [vmem:[%s1572_s1 + $0x38] sm:$0xff]  ;;  %v922_v23 = vpack.c.bf16 %v198_v18, %v196_v15  ;;  %v200_v25 = vld [vmem:[%s1572_s1 + $0x20] sm:$0xff]  ;;  %v202_v26 = vld [vmem:[%s1572_s1 + $0x30] sm:$0xff] }
  0x2a   :  { %v169_v21 = vsel %vm166_vm0, %v162_v6, %v163_v8  ;;  %v1207_v22 = vsel %vm153_vm2, %v149_v5, %v150_v7  ;;  %v924_v24 = vpack.c.bf16 %v203_v20, %v201_v19  ;;  %v1218_v27 = vsel %vm153_vm2, %v152_v12, %v149_v5  ;;  %181 = vrot.lane.b32.xlu0 %v146_v3, %s1104_s4  ;;  %v205_v28 = vld [vmem:[%s1572_s1 + $0x48] sm:$0xff]  ;;  %v207_v29 = vld [vmem:[%s1572_s1 + $0x58] sm:$0xff]  ;;  %v204_v35 = vld [vmem:[%s1572_s1 + $0x40] sm:$0xff] }
  0x2b   :  { %831 = vmatprep.mubr.msk.f32.mxu0 %vm191_vm1, %v169_v21  ;;  %185 = vrot.lane.b32.xlu1 %v148_v9, %s1104_s4  ;;  %v1230_v30 = vsel %vm166_vm0, %v163_v8, %v164_v11  ;;  %v1234_v31 = vsel %vm166_vm0, %v164_v11, %v165_v13  ;;  %v926_v32 = vpack.c.bf16 %v202_v26, %v200_v25  ;;  %v206_v36 = vld [vmem:[%s1572_s1 + $0x50] sm:$0xff]  ;;  %v209_v38 = vld [vmem:[%s1572_s1 + $0x68] sm:$0xff]  ;;  %v211_v39 = vld [vmem:[%s1572_s1 + $0x78] sm:$0xff] }
  0x2c   :  { %921 = vmatprep.subr.bf16.mxu0 %v920_v17  ;;  %v1238_v33 = vsel %vm153_vm2, %v150_v7, %v151_v16  ;;  %v928_v34 = vpack.c.bf16 %v207_v29, %v205_v28  ;;  %v1248_v37 = vsel %vm166_vm0, %v165_v13, %v162_v6  ;;  %v1258_v40 = vsel %vm153_vm2, %v151_v16, %v152_v12  ;;  %v208_v43 = vld [vmem:[%s1572_s1 + $0x60] sm:$0xff]  ;;  %v210_v44 = vld [vmem:[%s1572_s1 + $0x70] sm:$0xff]  ;;  %v213_v45 = vld [vmem:[%s1572_s1 + $0x88] sm:$0xff] }
  0x2d   :  { %923 = vmatpush1.bf16.msra.mxu0 %v922_v23  ;;  %v930_v41 = vpack.c.bf16 %v206_v36, %v204_v35  ;;  %v932_v42 = vpack.c.bf16 %v211_v39, %v209_v38  ;;  %v215_v46 = vld [vmem:[%s1572_s1 + $0x98] sm:$0xff]  ;;  %v934_v47 = vpack.c.bf16 %v210_v44, %v208_v43  ;;  %v212_v49 = vld [vmem:[%s1572_s1 + $0x80] sm:$0xff]  ;;  %v214_v50 = vld [vmem:[%s1572_s1 + $0x90] sm:$0xff]  ;;  %v53_v36 = vadd.s32 8, %v1167_v1 }
  0x2e   :  { %925 = vmatprep.subr.bf16.mxu0 %v924_v24  ;;  %v936_v48 = vpack.c.bf16 %v215_v46, %v213_v45  ;;  %v217_v51 = vld [vmem:[%s1572_s1 + $0xa8] sm:$0xff]  ;;  %v219_v52 = vld [vmem:[%s1572_s1 + $0xb8] sm:$0xff]  ;;  %v938_v53 = vpack.c.bf16 %v214_v50, %v212_v49  ;;  %v216_v55 = vld [vmem:[%s1572_s1 + $0xa0] sm:$0xff]  ;;  %v60_v38 = vand.u32 15, %v1167_v1  ;;  %v55_v43 = vadd.s32 24, %v1167_v1 }
  0x2f   :  { %v940_v54 = vpack.c.bf16 %v219_v52, %v217_v51  ;;  %v218_v56 = vld [vmem:[%s1572_s1 + $0xb0] sm:$0xff]  ;;  %v221_v57 = vld [vmem:[%s1572_s1 + $0xc8] sm:$0xff]  ;;  %v223_v58 = vld [vmem:[%s1572_s1 + $0xd8] sm:$0xff]  ;;  %v67_v39 = vand.u32 15, %v53_v36  ;;  %v1105_v44 = vmov 0.0  }
  0x30   :  { %v942_v59 = vpack.c.bf16 %v218_v56, %v216_v55  ;;  %v944_v60 = vpack.c.bf16 %v223_v58, %v221_v57  ;;  %v220_v61 = vld [vmem:[%s1572_s1 + $0xc0] sm:$0xff]  ;;  %v222_v62 = vld [vmem:[%s1572_s1 + $0xd0] sm:$0xff]  ;;  %v225_v63 = vld [vmem:[%s1572_s1 + $0xe8] sm:$0xff]  ;;  %vm104_vm3 = vcmp.ge.s32.totalorder %v60_v38, 1  ;;  %882 = vmatprep.mubr.msk.f32.mxu1 %vm1107_vm7, %v1105_v44 }
  0x31   :  { %927 = vmatpush1.bf16.msra.mxu0 %v926_v32  ;;  %v227_v0 = vld [vmem:[%s1572_s1 + $0xf8] sm:$0xff]  ;;  %v946_v2 = vpack.c.bf16 %v222_v62, %v220_v61  ;;  %v224_v4 = vld [vmem:[%s1572_s1 + $0xe0] sm:$0xff]  ;;  %v226_v5 = vld [vmem:[%s1572_s1 + $0xf0] sm:$0xff]  ;;  %vm129_vm4 = vcmp.lt.s32.totalorder %v67_v39, 15  ;;  %v1366_v45 = vsel %vm104_vm3, 1.0, %v1105_v44  ;;  %v1106_v61 = vmov 0.0|0.0  }
  0x32   :  { %929 = vmatprep.subr.bf16.mxu0 %v928_v34  ;;  %v948_v3 = vpack.c.bf16 %v227_v0, %v225_v63  ;;  %v229_v6 = vld [vmem:[%s1572_s1 + $0x108] sm:$0xff]  ;;  %v231_v7 = vld [vmem:[%s1572_s1 + $0x118] sm:$0xff]  ;;  %v950_v8 = vpack.c.bf16 %v226_v5, %v224_v4  ;;  %v228_v10 = vld [vmem:[%s1572_s1 + $0x100] sm:$0xff]  ;;  %v1368_v46 = vsel %vm129_vm4, 1.0, %v1105_v44  ;;  %968 = vmatprep.subr.bf16.mxu1 %v1106_v61 }
  0x33   :  { %v952_v9 = vpack.c.bf16 %v231_v7, %v229_v6  ;;  %v230_v11 = vld [vmem:[%s1572_s1 + $0x110] sm:$0xff]  ;;  %v233_v12 = vld [vmem:[%s1572_s1 + $0x128] sm:$0xff]  ;;  %v235_v13 = vld [vmem:[%s1572_s1 + $0x138] sm:$0xff]  ;;  %v172_v49 = vmul.f32 %v1368_v46, %v1230_v30 }
  0x34   :  { %v954_v14 = vpack.c.bf16 %v230_v11, %v228_v10  ;;  %v956_v15 = vpack.c.bf16 %v235_v13, %v233_v12  ;;  %v232_v16 = vld [vmem:[%s1572_s1 + $0x120] sm:$0xff]  ;;  %v234_v17 = vld [vmem:[%s1572_s1 + $0x130] sm:$0xff]  ;;  %v237_v18 = vld [vmem:[%s1572_s1 + $0x148] sm:$0xff] }
  0x35   :  { %931 = vmatpush1.bf16.msra.mxu0 %v930_v41  ;;  %v239_v19 = vld [vmem:[%s1572_s1 + $0x158] sm:$0xff]  ;;  %v958_v20 = vpack.c.bf16 %v234_v17, %v232_v16  ;;  %v236_v23 = vld [vmem:[%s1572_s1 + $0x140] sm:$0xff]  ;;  %v238_v24 = vld [vmem:[%s1572_s1 + $0x150] sm:$0xff]  ;;  %v54_v41 = vadd.s32 16, %v1167_v1 }
  0x36   :  { %933 = vmatprep.subr.bf16.mxu0 %v932_v42  ;;  %v960_v21 = vpack.c.bf16 %v239_v19, %v237_v18  ;;  %v241_v25 = vld [vmem:[%s1572_s1 + $0x168] sm:$0xff]  ;;  %v243_v26 = vld [vmem:[%s1572_s1 + $0x178] sm:$0xff]  ;;  %v962_v28 = vpack.c.bf16 %v238_v24, %v236_v23  ;;  %v240_v32 = vld [vmem:[%s1572_s1 + $0x160] sm:$0xff] }
  0x37   :  { %v964_v29 = vpack.c.bf16 %v243_v26, %v241_v25  ;;  %v242_v34 = vld [vmem:[%s1572_s1 + $0x170] sm:$0xff]  ;;  %v74_v42 = vand.u32 15, %v54_v41  ;;  %v381_v63 = vld [vmem:[#allocation4 + $0x20] sm:$0xff] }
  0x38   :  { %v966_v35 = vpack.c.bf16 %v242_v34, %v240_v32 }
  0x39   :  { %935 = vmatpush1.bf16.msra.mxu0 %v934_v47  ;;  %v158_v47 = vmul.f32 %v1366_v45, %v1218_v27  ;;  %vm106_vm5 = vcmp.ge.s32.totalorder %v74_v42, 1 }
  0x3a   :  { %937 = vmatprep.subr.bf16.mxu0 %v936_v48  ;;  %v81_v48 = vand.u32 15, %v55_v43  ;;  %v1374_v51 = vsel %vm106_vm5, 1.0, %v1105_v44 }
  0x3c   :  { %vm131_vm6 = vcmp.lt.s32.totalorder %v81_v48, 15 }
  0x3d   :  { %939 = vmatpush1.bf16.msra.mxu0 %v938_v53  ;;  %v1380_v27 = vsel %vm131_vm6, 1.0, %v1105_v44 }
  0x3e   :  { %941 = vmatprep.subr.bf16.mxu0 %v940_v54  ;;  %v160_v54 = vmul.f32 %v1374_v51, %v1238_v33  ;;  %v174_v57 = vmul.f32 %v1380_v27, %v1248_v37  ;;  %v380_v37 = vld [vmem:[#allocation4 + $0x18] sm:$0xff] }
  0x41   :  { %943 = vmatpush1.bf16.msra.mxu0 %v942_v59  ;;  %v377_v59 = vld [vmem:[#allocation4] sm:$0xff] }
  0x42   :  { %945 = vmatprep.subr.bf16.mxu0 %v944_v60  ;;  %v378_v60 = vld [vmem:[#allocation4 + $0x8] sm:$0xff] }
  0x45   :  { %947 = vmatpush1.bf16.msra.mxu0 %v946_v2  ;;  %v383_v2 = vld [vmem:[#allocation4 + $0x30] sm:$0xff] }
  0x46   :  { %949 = vmatprep.subr.bf16.mxu0 %v948_v3  ;;  %v384_v3 = vld [vmem:[#allocation4 + $0x38] sm:$0xff] }
  0x47   :  { %v978_v4 = vpack.c.bf16 %v384_v3, %v383_v2  ;;  %v556_v2 = vld [vmem:[#allocation2 + $0x58] sm:$0xff] }
  0x49   :  { %951 = vmatpush1.bf16.msra.mxu0 %v950_v8 }
  0x4a   :  { %953 = vmatprep.subr.bf16.mxu0 %v952_v9 }
  0x4d   :  { %955 = vmatpush1.bf16.msra.mxu0 %v954_v14 }
  0x4e   :  { %957 = vmatprep.subr.bf16.mxu0 %v956_v15 }
  0x51   :  { %959 = vmatpush1.bf16.msra.mxu0 %v958_v20 }
  0x52   :  { %961 = vmatprep.subr.bf16.mxu0 %v960_v21 }
  0x55   :  { %963 = vmatpush1.bf16.msra.mxu0 %v962_v28 }
  0x56   :  { %965 = vmatprep.subr.bf16.mxu0 %v964_v29 }
  0x59   :  { %967 = vmatpush1.bf16.msra.mxu0 %v966_v35 }
  0x5a   :  { %1016 = vmatprep.subr.bf16.mxu0 %v1106_v61 }
  0x98   :  { %v180_v50 = vpop.permute.xlu0 %179 }
  0x99   :  { %v192_v52 = vsel %vm191_vm1, %v158_v47, %v180_v50  ;;  %v184_v53 = vpop.permute.xlu1 %183 }
  0x9a   :  { %321 = vmatmul.mubr.f32.vlgmr.msra.gmra.mrb[0].mxu0 %v192_v52  ;;  %v194_v30 = vsel %vm191_vm1, %v160_v54, %v184_v53  ;;  %v545_v54 = vld [vmem:[#allocation2] sm:$0xff] }
  0x9b   :  { %832 = vmatprep.mubr.msk.f32.mxu0 %vm191_vm1, %v172_v49 }
  0x9c   :  { %v182_v55 = vpop.permute.xlu0 %181 }
  0x9d   :  { %v193_v56 = vsel %vm191_vm1, %v1207_v22, %v182_v55  ;;  %v186_v58 = vpop.permute.xlu1 %185  ;;  %v969_v22 = vpack.c.bf16 %v378_v60, %v377_v59  ;;  %v546_v55 = vld [vmem:[#allocation2 + $0x8] sm:$0xff] }
  0x9e   :  { %327 = vmatmul.mubr.f32.gmra.mrb[2].mxu0 %v193_v56  ;;  %v195_v33 = vsel %vm191_vm1, %v1258_v40, %v186_v58  ;;  %v382_v40 = vld [vmem:[#allocation4 + $0x28] sm:$0xff]  ;;  %v547_v56 = vld [vmem:[#allocation2 + $0x10] sm:$0xff] }
  0x9f   :  { %833 = vmatprep.mubr.msk.f32.mxu0 %vm191_vm1, %v1234_v31  ;;  %970 = vmatpush3.bf16.msra.mxu1 %v969_v22  ;;  %v379_v31 = vld [vmem:[#allocation4 + $0x10] sm:$0xff]  ;;  %v975_v0 = vpack.c.bf16 %v382_v40, %v381_v63  ;;  %v550_v59 = vld [vmem:[#allocation2 + $0x28] sm:$0xff] }
  0xa0   :  { %971 = vmatprep.subr.bf16.mxu1 %v1106_v61  ;;  %v972_v62 = vpack.c.bf16 %v380_v37, %v379_v31  ;;  %v551_v22 = vld [vmem:[#allocation2 + $0x30] sm:$0xff]  ;;  %v552_v31 = vld [vmem:[#allocation2 + $0x38] sm:$0xff]  ;;  %v554_v63 = vld [vmem:[#allocation2 + $0x48] sm:$0xff] }
  0xa1   :  { %v990_v37 = vpack.c.bf16 %v552_v31, %v551_v22 }
  0xa2   :  { %333 = vmatmul.mubr.f32.gmra.mrb[4].mxu0 %v194_v30  ;;  %v981_v30 = vpack.c.bf16 %v546_v55, %v545_v54 }
  0xa3   :  { %834 = vmatprep.mubr.msk.f32.mxu0 %vm191_vm1, %v174_v57  ;;  %973 = vmatpush3.bf16.msra.mxu1 %v972_v62  ;;  %v548_v57 = vld [vmem:[#allocation2 + $0x18] sm:$0xff]  ;;  %v553_v62 = vld [vmem:[#allocation2 + $0x40] sm:$0xff] }
  0xa4   :  { %974 = vmatprep.subr.bf16.mxu1 %v1106_v61  ;;  %v984_v58 = vpack.c.bf16 %v548_v57, %v547_v56  ;;  %v993_v40 = vpack.c.bf16 %v554_v63, %v553_v62 }
  0xa6   :  { %339 = vmatmul.mubr.f32.gmra.mrb[6].mxu0 %v195_v33  ;;  %v549_v33 = vld [vmem:[#allocation2 + $0x20] sm:$0xff] }
  0xa7   :  { %917 = vmatprep.mubr.msk.f32.mxu0 %vm1107_vm7, %v1105_v44  ;;  %976 = vmatpush3.bf16.msra.mxu1 %v975_v0  ;;  %v987_v60 = vpack.c.bf16 %v550_v59, %v549_v33  ;;  %v555_v0 = vld [vmem:[#allocation2 + $0x50] sm:$0xff] }
  0xa8   :  { %977 = vmatprep.subr.bf16.mxu1 %v1106_v61  ;;  %v996_v3 = vpack.c.bf16 %v556_v2, %v555_v0 }
  0xab   :  { %979 = vmatpush3.bf16.msra.mxu1 %v978_v4  ;;  %v557_v4 = vld [vmem:[#allocation2 + $0x60] sm:$0xff] }
  0xac   :  { %980 = vmatprep.subr.bf16.mxu1 %v1106_v61 }
 0x16d   :  { %v1398_v5 = vpop.f32.mrb[0].mxu0 }
 0x16e   :  { %v1400_v6 = vpop.f32.mrb[1].mxu0 }
 0x16f   :  { %v358_v7 = vmul.f32 %v1400_v6, %v1400_v6  ;;  %v345_v10 = vsel %vm191_vm1, %v1400_v6, 0.0 }
 0x171   :  { %v1404_v8 = vpop.f32.mrb[2].mxu0  ;;  %v362_v14 = vsel %vm191_vm1, %v358_v7, 0.0  ;;  %v558_v7 = vld [vmem:[#allocation2 + $0x68] sm:$0xff] }
 0x172   :  { %v1406_v9 = vpop.f32.mrb[3].mxu0 }
 0x173   :  { %v346_v11 = vsel %vm191_vm1, %v1406_v9, 0.0  ;;  %v359_v12 = vmul.f32 %v1406_v9, %v1406_v9 }
 0x174   :  { %v347_v13 = vadd.f32 %v346_v11, %v345_v10  ;;  %v999_v10 = vpack.c.bf16 %v558_v7, %v557_v4  ;;  %v559_v11 = vld [vmem:[#allocation2 + $0x70] sm:$0xff] }
 0x175   :  { %v363_v15 = vsel %vm191_vm1, %v359_v12, 0.0  ;;  %v1416_v16 = vpop.f32.mrb[4].mxu0  ;;  %v560_v12 = vld [vmem:[#allocation2 + $0x78] sm:$0xff] }
 0x176   :  { %v364_v17 = vadd.f32 %v363_v15, %v362_v14  ;;  %v1418_v18 = vpop.f32.mrb[5].mxu0  ;;  %v561_v14 = vld [vmem:[#allocation2 + $0x80] sm:$0xff]  ;;  %v562_v15 = vld [vmem:[#allocation2 + $0x88] sm:$0xff] }
 0x177   :  { %v348_v19 = vsel %vm191_vm1, %v1418_v18, 0.0  ;;  %v360_v20 = vmul.f32 %v1418_v18, %v1418_v18 }
 0x178   :  { %v349_v21 = vadd.f32 %v348_v19, %v347_v13  ;;  %v1002_v13 = vpack.c.bf16 %v560_v12, %v559_v11  ;;  %v563_v19 = vld [vmem:[#allocation2 + $0x90] sm:$0xff] }
 0x179   :  { %v365_v23 = vsel %vm191_vm1, %v360_v20, 0.0  ;;  %v1425_v24 = vpop.f32.mrb[6].mxu0  ;;  %v564_v20 = vld [vmem:[#allocation2 + $0x98] sm:$0xff] }
 0x17a   :  { %v366_v25 = vadd.f32 %v365_v23, %v364_v17  ;;  %v1427_v26 = vpop.f32.mrb[7].mxu0  ;;  %v1005_v17 = vpack.c.bf16 %v562_v15, %v561_v14  ;;  %v565_v23 = vld [vmem:[#allocation2 + $0xa0] sm:$0xff] }
 0x17b   :  { %v350_v28 = vsel %vm191_vm1, %v1427_v26, 0.0  ;;  %v361_v29 = vmul.f32 %v1427_v26, %v1427_v26 }
 0x17c   :  { %v351_v32 = vadd.f32 %v350_v28, %v349_v21  ;;  %v1008_v21 = vpack.c.bf16 %v564_v20, %v563_v19 }
 0x17d   :  { %v367_v34 = vsel %vm191_vm1, %v361_v29, 0.0  ;;  %v567_v29 = vld [vmem:[#allocation2 + $0xb0] sm:$0xff] }
 0x17e   :  { %v352_v35 = vrot.slane %v351_v32, 4  ;;  %v368_v36 = vadd.f32 %v367_v34, %v366_v25  ;;  %v566_v25 = vld [vmem:[#allocation2 + $0xa8] sm:$0xff] }
 0x17f   :  { %v1011_v28 = vpack.c.bf16 %v566_v25, %v565_v23 }
 0x180   :  { %v353_v38 = vadd.f32 %v352_v35, %v351_v32  ;;  %v369_v39 = vrot.slane %v368_v36, 4  ;;  %v568_v32 = vld [vmem:[#allocation2 + $0xb8] sm:$0xff] }
 0x181   :  { %v1014_v34 = vpack.c.bf16 %v568_v32, %v567_v29 }
 0x182   :  { %v354_v41 = vrot.slane %v353_v38, 2  ;;  %v370_v42 = vadd.f32 %v369_v39, %v368_v36 }
 0x184   :  { %v355_v43 = vadd.f32 %v354_v41, %v353_v38  ;;  %v371_v44 = vrot.slane %v370_v42, 2 }
 0x186   :  { %v356_v47 = vrot.slane %v355_v43, 1  ;;  %v372_v48 = vadd.f32 %v371_v44, %v370_v42 }
 0x188   :  { %v373_v49 = vrot.slane %v372_v48, 1  ;;  %v357_v50 = vadd.f32 %v356_v47, %v355_v43  ;;  %v1450_v43 = vld [vmem:[%s1574_s3] sm:$0x1f]  ;;  %v1454_v47 = vsub.s32 1, %v1167_v1 }
 0x189   :  { %v466_v44 = vrot.slane %v1450_v43, 7 }
 0x18a   :  { %v374_v52 = vadd.f32 %v373_v49, %v372_v48 }
 0x18c   :  { %v376_v53 = vsel %vm375_vm8, %v357_v50, %v374_v52 }
 0x18d   :  { %883 = vmatmul.mubr.msk.f32.vlgmr.msra.gmra.mrb[0].mxu1 %vm191_vm1, %v376_v53 }
 0x18e   :  { %982 = vmatpush1.bf16.msra.mxu1 %v981_v30 }
 0x18f   :  { %983 = vmatprep.subr.bf16.mxu1 %v1106_v61 }
 0x192   :  { %985 = vmatpush1.bf16.msra.mxu1 %v984_v58 }
 0x193   :  { %986 = vmatprep.subr.bf16.mxu1 %v1106_v61 }
 0x196   :  { %988 = vmatpush1.bf16.msra.mxu1 %v987_v60 }
 0x197   :  { %989 = vmatprep.subr.bf16.mxu1 %v1106_v61 }
 0x19a   :  { %991 = vmatpush1.bf16.msra.mxu1 %v990_v37 }
 0x19b   :  { %992 = vmatprep.subr.bf16.mxu1 %v1106_v61 }
 0x19e   :  { %994 = vmatpush1.bf16.msra.mxu1 %v993_v40 }
 0x19f   :  { %995 = vmatprep.subr.bf16.mxu1 %v1106_v61 }
 0x1a2   :  { %997 = vmatpush1.bf16.msra.mxu1 %v996_v3 }
 0x1a3   :  { %998 = vmatprep.subr.bf16.mxu1 %v1106_v61 }
 0x1a6   :  { %1000 = vmatpush1.bf16.msra.mxu1 %v999_v10 }
 0x1a7   :  { %1001 = vmatprep.subr.bf16.mxu1 %v1106_v61 }
 0x1aa   :  { %1003 = vmatpush1.bf16.msra.mxu1 %v1002_v13 }
 0x1ab   :  { %1004 = vmatprep.subr.bf16.mxu1 %v1106_v61 }
 0x1ae   :  { %1006 = vmatpush1.bf16.msra.mxu1 %v1005_v17 }
 0x1af   :  { %1007 = vmatprep.subr.bf16.mxu1 %v1106_v61 }
 0x1b2   :  { %1009 = vmatpush1.bf16.msra.mxu1 %v1008_v21 }
 0x1b3   :  { %1010 = vmatprep.subr.bf16.mxu1 %v1106_v61 }
 0x1b6   :  { %1012 = vmatpush1.bf16.msra.mxu1 %v1011_v28 }
 0x1b7   :  { %1013 = vmatprep.subr.bf16.mxu1 %v1106_v61 }
 0x1ba   :  { %1015 = vmatpush1.bf16.msra.mxu1 %v1014_v34 }
 0x260   :  { %v454_v35 = vpop.f32.mrb[0].mxu1 }
 0x261   :  { %v458_v36 = vmul.f32 %v454_v35, %v454_v35  ;;  %v884_v38 = vpop.f32.mrb[1].mxu1 }
 0x263   :  { %v460_v39 = vrot.slane %v458_v36, 7 }
 0x265   :  { %v462_v41 = vsub.f32 %v454_v35, %v460_v39 }
 0x267   :  { %v463_v42 = vadd.f32 1e-05, %v462_v41 }
 0x269   :  { %1048 = vrsqrt.f32 %v463_v42  ;;  %v689_v42 = vld [vmem:[%s1576_s5] sm:$0xff] }
 0x273   :  { %v1049_v48 = vpop.eup %1048 }
 0x274   :  { %v468_v49 = vmul.f32 %v1049_v48, %v466_v44  ;;  %v690_v44 = vld [vmem:[%s1576_s5 + $0x8] sm:$0xff]  ;;  %v692_v48 = vld [vmem:[%s1576_s5 + $0x18] sm:$0xff] }
 0x276   :  { %v470_v50 = vrot.slane %v468_v49, 1  ;;  %v480_v52 = vrot.slane %v468_v49, %v1454_v47 }
 0x278   :  { %v472_v53 = vmul.f32 %v470_v50, %v454_v35  ;;  %v482_v54 = vmul.f32 %v480_v52, %v1406_v9  ;;  %v481_v55 = vmul.f32 %v480_v52, %v1400_v6  ;;  %v484_v56 = vmul.f32 %v480_v52, %v1427_v26  ;;  %v693_v50 = vld [vmem:[%s1576_s5 + $0x20] sm:$0xff] }
 0x279   :  { %v483_v30 = vmul.f32 %v480_v52, %v1418_v18  ;;  %v694_v52 = vld [vmem:[%s1576_s5 + $0x28] sm:$0xff] }
 0x27a   :  { %v474_v57 = vrot.slane %v472_v53, 7  ;;  %v1023_v53 = vpack.c.bf16 %v694_v52, %v693_v50 }
 0x27c   :  { %v476_v58 = vsub.f32 %v1450_v43, %v474_v57  ;;  %v698_v57 = vld [vmem:[%s1576_s5 + $0x48] sm:$0xff] }
 0x27e   :  { %v488_v33 = vrot.slane %v476_v58, %v1454_v47 }
 0x280   :  { %v490_v59 = vadd.f32 %v488_v33, %v482_v54  ;;  %v489_v60 = vadd.f32 %v488_v33, %v481_v55  ;;  %v492_v22 = vadd.f32 %v488_v33, %v484_v56  ;;  %v491_v31 = vadd.f32 %v488_v33, %v483_v30  ;;  %v695_v54 = vld [vmem:[%s1576_s5 + $0x30] sm:$0xff]  ;;  %v696_v55 = vld [vmem:[%s1576_s5 + $0x38] sm:$0xff]  ;;  %v697_v30 = vld [vmem:[%s1576_s5 + $0x40] sm:$0xff] }
 0x281   :  { %v1026_v56 = vpack.c.bf16 %v696_v55, %v695_v54  ;;  %v1029_v58 = vpack.c.bf16 %v698_v57, %v697_v30  ;;  %v699_v33 = vld [vmem:[%s1576_s5 + $0x50] sm:$0xff] }
 0x282   :  { %v494_v37 = vmul.f32 0.1, %v490_v59  ;;  %v493_v62 = vmul.f32 0.1, %v489_v60  ;;  %v496_v63 = vmul.f32 0.1, %v492_v22 }
 0x283   :  { %v495_v40 = vmul.f32 0.1, %v491_v31 }
 0x284   :  { %v498_v9 = vmax.f32 %v490_v59, %v494_v37  ;;  %v497_v0 = vmax.f32 %v489_v60, %v493_v62  ;;  %v500_v6 = vmax.f32 %v492_v22, %v496_v63  ;;  %v700_v59 = vld [vmem:[%s1576_s5 + $0x58] sm:$0xff]  ;;  %v701_v22 = vld [vmem:[%s1576_s5 + $0x60] sm:$0xff]  ;;  %v703_v37 = vld [vmem:[%s1576_s5 + $0x70] sm:$0xff] }
 0x285   :  { %v499_v2 = vmax.f32 %v491_v31, %v495_v40  ;;  %v1032_v60 = vpack.c.bf16 %v700_v59, %v699_v33  ;;  %v702_v31 = vld [vmem:[%s1576_s5 + $0x68] sm:$0xff]  ;;  %v704_v63 = vld [vmem:[%s1576_s5 + $0x78] sm:$0xff] }
 0x286   :  { %531 = vrot.lane.b32.xlu1 %v498_v9, %s1104_s4  ;;  %529 = vrot.lane.b32.xlu0 %v497_v0, %s1104_s4  ;;  %v501_v18 = vrot.slane %v497_v0, 7  ;;  %v513_v26 = vrot.slane %v497_v0, 1  ;;  %v514_v3 = vrot.slane %v498_v9, 1  ;;  %v504_v4 = vrot.slane %v500_v6, 7 }
 0x287   :  { %v503_v7 = vrot.slane %v499_v2, 7  ;;  %v515_v10 = vrot.slane %v499_v2, 1  ;;  %v502_v11 = vrot.slane %v498_v9, 7  ;;  %v516_v12 = vrot.slane %v500_v6, 1 }
 0x288   :  { %v519_v13 = vsel %vm166_vm0, %v513_v26, %v514_v3  ;;  %v508_v14 = vsel %vm153_vm2, %v504_v4, %v501_v18  ;;  %v1035_v62 = vpack.c.bf16 %v702_v31, %v701_v22  ;;  %v1038_v40 = vpack.c.bf16 %v704_v63, %v703_v37 }
 0x289   :  { %836 = vmatprep.mubr.msk.f32.mxu1 %vm191_vm1, %v519_v13  ;;  %v518_v15 = vsel %vm166_vm0, %v514_v3, %v515_v10  ;;  %v507_v17 = vsel %vm153_vm2, %v501_v18, %v502_v11  ;;  %v517_v19 = vsel %vm166_vm0, %v515_v10, %v516_v12  ;;  %v506_v20 = vsel %vm153_vm2, %v502_v11, %v503_v7 }
 0x28a   :  { %535 = vrot.lane.b32.xlu1 %v500_v6, %s1104_s4  ;;  %533 = vrot.lane.b32.xlu0 %v499_v2, %s1104_s4  ;;  %v520_v21 = vsel %vm166_vm0, %v516_v12, %v513_v26  ;;  %v505_v23 = vsel %vm153_vm2, %v503_v7, %v504_v4  ;;  %v509_v25 = vmul.f32 %v1366_v45, %v508_v14 }
 0x28b   :  { %v522_v32 = vmul.f32 %v1368_v46, %v518_v15  ;;  %v511_v38 = vmul.f32 %v1374_v51, %v506_v20  ;;  %v524_v45 = vmul.f32 %v1380_v27, %v520_v21  ;;  %v1017_v51 = vpack.c.bf16 %v690_v44, %v689_v42  ;;  %v691_v27 = vld [vmem:[%s1576_s5 + $0x10] sm:$0xff] }
 0x28c   :  { %v1020_v49 = vpack.c.bf16 %v692_v48, %v691_v27  ;;  %v782_v48 = vrot.slane %v1450_v43, 1 }
 0x28d   :  { %1018 = vmatpush3.bf16.msra.mxu0 %v1017_v51 }
 0x28e   :  { %1019 = vmatprep.subr.bf16.mxu0 %v1106_v61 }
 0x291   :  { %1021 = vmatpush3.bf16.msra.mxu0 %v1020_v49 }
 0x292   :  { %1022 = vmatprep.subr.bf16.mxu0 %v1106_v61 }
 0x295   :  { %1024 = vmatpush3.bf16.msra.mxu0 %v1023_v53 }
 0x296   :  { %1025 = vmatprep.subr.bf16.mxu0 %v1106_v61 }
 0x299   :  { %1027 = vmatpush3.bf16.msra.mxu0 %v1026_v56  ;;  %v803_v56 = vsub.s32 3, %v1167_v1 }
 0x29a   :  { %1028 = vmatprep.subr.bf16.mxu0 %v1106_v61 }
 0x29d   :  { %1030 = vmatpush3.bf16.msra.mxu0 %v1029_v58 }
 0x29e   :  { %1031 = vmatprep.subr.bf16.mxu0 %v1106_v61 }
 0x2a1   :  { %1033 = vmatpush3.bf16.msra.mxu0 %v1032_v60 }
 0x2a2   :  { %1034 = vmatprep.subr.bf16.mxu0 %v1106_v61 }
 0x2a5   :  { %1036 = vmatpush3.bf16.msra.mxu0 %v1035_v62 }
 0x2a6   :  { %1037 = vmatprep.subr.bf16.mxu0 %v1106_v61 }
 0x2a9   :  { %1039 = vmatpush3.bf16.msra.mxu0 %v1038_v40 }
 0x2f8   :  { %v530_v28 = vpop.permute.xlu0 %529  ;;  %v532_v34 = vpop.permute.xlu1 %531 }
 0x2f9   :  { %v541_v29 = vsel %vm191_vm1, %v509_v25, %v530_v28  ;;  %v542_v35 = vsel %vm191_vm1, %v507_v17, %v532_v34 }
 0x2fa   :  { %646 = vmatmul.mubr.f32.vlgmr.msra.gmra.mrb[2].mxu1 %v541_v29 }
 0x2fb   :  { %837 = vmatprep.mubr.msk.f32.mxu1 %vm191_vm1, %v522_v32 }
 0x2fc   :  { %v534_v36 = vpop.permute.xlu0 %533  ;;  %v536_v41 = vpop.permute.xlu1 %535 }
 0x2fd   :  { %v543_v39 = vsel %vm191_vm1, %v511_v38, %v534_v36  ;;  %v544_v46 = vsel %vm191_vm1, %v505_v23, %v536_v41 }
 0x2fe   :  { %651 = vmatmul.mubr.f32.gmra.mrb[4].mxu1 %v542_v35 }
 0x2ff   :  { %838 = vmatprep.mubr.msk.f32.mxu1 %vm191_vm1, %v517_v19 }
 0x302   :  { %656 = vmatmul.mubr.f32.gmra.mrb[6].mxu1 %v543_v39 }
 0x303   :  { %839 = vmatprep.mubr.msk.f32.mxu1 %vm191_vm1, %v524_v45 }
 0x306   :  { %661 = vmatmul.mubr.f32.gmra.mrb[8].mxu1 %v544_v46 }
 0x3cd   :  { %v647_v9 = vpop.f32.mrb[2].mxu1 }
 0x3ce   :  { %v648_v0 = vadd.f32 %v647_v9, %v1398_v5  ;;  %v649_v6 = vpop.f32.mrb[3].mxu1 }
 0x3d0   :  { %v675_v11 = vmul.f32 %v648_v0, %v648_v0 }
 0x3d1   :  { %v652_v2 = vpop.f32.mrb[4].mxu1 }
 0x3d2   :  { %v653_v18 = vadd.f32 %v652_v2, %v1404_v8  ;;  %v654_v26 = vpop.f32.mrb[5].mxu1 }
 0x3d4   :  { %v676_v4 = vmul.f32 %v653_v18, %v653_v18  ;;  %v666_v12 = vadd.f32 %v653_v18, %v648_v0 }
 0x3d5   :  { %v657_v3 = vpop.f32.mrb[6].mxu1 }
 0x3d6   :  { %v658_v7 = vadd.f32 %v657_v3, %v1416_v16  ;;  %v659_v10 = vpop.f32.mrb[7].mxu1  ;;  %v679_v15 = vadd.f32 %v676_v4, %v675_v11 }
 0x3d8   :  { %v677_v13 = vmul.f32 %v658_v7, %v658_v7  ;;  %v667_v61 = vadd.f32 %v666_v12, %v658_v7 }
 0x3d9   :  { %v662_v14 = vpop.f32.mrb[8].mxu1 }
 0x3da   :  { %v663_v17 = vadd.f32 %v662_v14, %v1425_v24  ;;  %v664_v19 = vpop.f32.mrb[9].mxu1  ;;  %v680_v5 = vadd.f32 %v679_v15, %v677_v13 }
 0x3dc   :  { %v668_v20 = vadd.f32 %v667_v61, %v663_v17  ;;  %v678_v21 = vmul.f32 %v663_v17, %v663_v17 }
 0x3de   :  { %v669_v23 = vrot.slane %v668_v20, 4  ;;  %v681_v8 = vadd.f32 %v680_v5, %v678_v21 }
 0x3e0   :  { %v670_v25 = vadd.f32 %v669_v23, %v668_v20  ;;  %v682_v28 = vrot.slane %v681_v8, 4 }
 0x3e2   :  { %v671_v29 = vrot.slane %v670_v25, 2  ;;  %v683_v32 = vadd.f32 %v682_v28, %v681_v8 }
 0x3e4   :  { %v672_v16 = vadd.f32 %v671_v29, %v670_v25  ;;  %v684_v34 = vrot.slane %v683_v32, 2 }
 0x3e6   :  { %v673_v35 = vrot.slane %v672_v16, 1  ;;  %v685_v36 = vadd.f32 %v684_v34, %v683_v32 }
 0x3e8   :  { %v686_v38 = vrot.slane %v685_v36, 1  ;;  %v674_v39 = vadd.f32 %v673_v35, %v672_v16 }
 0x3ea   :  { %v687_v45 = vadd.f32 %v686_v38, %v685_v36 }
 0x3ec   :  { %v688_v41 = vsel %vm375_vm8, %v674_v39, %v687_v45 }
 0x3ed   :  { %918 = vmatmul.mubr.f32.vlgmr.msra.gmra.mrb[8].mxu0 %v688_v41 }
 0x4c0   :  { %v771_v24 = vpop.f32.mrb[8].mxu0 }
 0x4c1   :  { %v775_v46 = vmul.f32 %v771_v24, %v771_v24  ;;  %v919_v42 = vpop.f32.mrb[9].mxu0 }
 0x4c3   :  { %v777_v44 = vrot.slane %v775_v46, 7 }
 0x4c5   :  { %v779_v51 = vsub.f32 %v771_v24, %v777_v44 }
 0x4c7   :  { %v780_v27 = vadd.f32 1e-05, %v779_v51 }
 0x4c9   :  { %1050 = vrsqrt.f32 %v780_v27 }
 0x4d3   :  { %v1051_v49 = vpop.eup %1050 }
 0x4d4   :  { %v784_v50 = vmul.f32 %v1051_v49, %v782_v48 }
 0x4d6   :  { %v786_v52 = vrot.slane %v784_v50, 1  ;;  %v796_v54 = vrot.slane %v784_v50, %v1454_v47 }
 0x4d8   :  { %v788_v53 = vmul.f32 %v786_v52, %v771_v24  ;;  %v797_v57 = vmul.f32 %v796_v54, %v648_v0  ;;  %v798_v58 = vmul.f32 %v796_v54, %v653_v18  ;;  %v799_v33 = vmul.f32 %v796_v54, %v658_v7 }
 0x4d9   :  { %v800_v59 = vmul.f32 %v796_v54, %v663_v17 }
 0x4da   :  { %v790_v55 = vrot.slane %v788_v53, 5 }
 0x4dc   :  { %v792_v30 = vsub.f32 %v1450_v43, %v790_v55 }
 0x4de   :  { %v804_v60 = vrot.slane %v792_v30, %v803_v56 }
 0x4e0   :  { %v805_v22 = vadd.f32 %v804_v60, %v797_v57  ;;  %v806_v31 = vadd.f32 %v804_v60, %v798_v58  ;;  %v807_v37 = vadd.f32 %v804_v60, %v799_v33  ;;  %v808_v62 = vadd.f32 %v804_v60, %v800_v59 }
 0x4e2   :  { %v809_v63 = vmul.f32 0.1, %v805_v22  ;;  %v810_v40 = vmul.f32 0.1, %v806_v31  ;;  %v811_v9 = vmul.f32 0.1, %v807_v37 }
 0x4e3   :  { %v812_v6 = vmul.f32 0.1, %v808_v62 }
 0x4e4   :  { %v813_v2 = vmax.f32 %v805_v22, %v809_v63  ;;  %v814_v47 = vmax.f32 %v806_v31, %v810_v40  ;;  %v815_v26 = vmax.f32 %v807_v37, %v811_v9 }
 0x4e5   :  { %v816_v3 = vmax.f32 %v808_v62, %v812_v6 }
 0x4e6   :  { %817 = vst [vmem:[%s1577_s6] sm:$0xff] %v813_v2  ;;  %818 = vst [vmem:[%s1577_s6 + $0x8] sm:$0xff] %v814_v47 }
 0x4e7   :  { %819 = vst [vmem:[%s1577_s6 + $0x10] sm:$0xff] %v815_v26  ;;  %820 = vst [vmem:[%s1577_s6 + $0x18] sm:$0xff] %v816_v3 }
 0x4e8   :  { %825 = vsyncpa [#allocation3], 1 }
 0x4e9   :  { %826 = vsyncpa [#allocation5], 1 }

</bundles_post_ra>
